<compile_context>
chip_gen: v5e
topology: v5e:2x2
jax: 0.10.0
libtpu: 0.0.40
codegen_flags: <defaults>
</compile_context>

<pallas_src>
import functools
import math

import jax
import jax.numpy as jnp
from jax.experimental import pallas as pl
from jax.experimental.pallas import tpu as pltpu


# ----------------------------------------------------------------------------
# Kernel: fused single-layer LSTM (batch_first) + classifier head
# ----------------------------------------------------------------------------
def feature_sequence_kernel(x_ref, wih_ref, whh_ref, b_ref,
                            w1_ref, b1_ref, w2_ref, b2_ref,
                            o_ref, *, hidden_size, seq_len, batch):
    """x_ref: (T*B, D) time-major-flattened; weights [in, out]; o_ref: (B, C)."""
    H, T, B = hidden_size, seq_len, batch

    whh = whh_ref[...]                                   # (H, 4H), loop-invariant

    # (1) Input projection hoisted out of the recurrence: one MXU matmul over
    #     all T*B rows, with the folded LSTM bias added once.
    pregates = (jnp.dot(x_ref[...], wih_ref[...],
                        preferred_element_type=jnp.float32)
                + b_ref[...])                            # (T*B, 4H), 4H = 128 lanes

    # (2) Per-step pre-gate slabs: static slices, independent of h, hoisted
    #     off the serialized h->h chain.
    pregates_t = [pregates[t * B:(t + 1) * B, :] for t in range(T)]

    h = jnp.zeros((B, H), jnp.float32)
    c = jnp.zeros((B, H), jnp.float32)

    # Statically unrolled recurrence (T is small): per step only the recurrent
    # matmul + a handful of VPU/EUP ops sit on the critical path.
    # TODO(synk): for much larger T switch to lax.fori_loop(..., unroll=True)
    # to bound trace size / vreg live ranges.
    for t in range(T):
        gates = pregates_t[t] + jnp.dot(h, whh,
                                        preferred_element_type=jnp.float32)
        # (3) Full-width activations (2 EUP pushes/step), then slice.
        sig = jax.nn.sigmoid(gates)                      # (B, 4H)
        tnh = jnp.tanh(gates)                            # (B, 4H)
        i_g = sig[:, 0 * H:1 * H]
        f_g = sig[:, 1 * H:2 * H]
        g_g = tnh[:, 2 * H:3 * H]
        o_g = sig[:, 3 * H:4 * H]
        c = f_g * c + i_g * g_g
        h = o_g * jnp.tanh(c)

    # Classifier head on the last hidden state (== lstm_out[:, -1, :]).
    # Dropout is identity at inference.
    z = jnp.maximum(
        jnp.dot(h, w1_ref[...], preferred_element_type=jnp.float32)
        + b1_ref[...], 0.0)                              # (B, 256)
    o_ref[...] = (jnp.dot(z, w2_ref[...], preferred_element_type=jnp.float32)
                  + b2_ref[...])                         # (B, C)


# ----------------------------------------------------------------------------
# Wrapper
# ----------------------------------------------------------------------------
def feature_sequence_processing(sequence, params):
    """sequence: (B, T, D) batch_first -> preds (B, class_num).

    params use PyTorch layouts: weight_ih_l0 (4H, D), weight_hh_l0 (4H, H),
    bias_*_l0 (4H,), fc1_w (256, H), fc1_b (256,), fc2_w (C, 256), fc2_b (C,).
    """
    B, T, D = sequence.shape
    H = params["weight_hh_l0"].shape[1]
    C = params["fc2_w"].shape[0]
    f32 = jnp.float32

    # Layout plumbing in the wrapper (one-time XLA ops, outside the kernel):
    # time-major flatten so the input projection is one big matmul; weights
    # pre-transposed to [in, out]; the two LSTM biases folded into one (1, 4H).
    x2d = jnp.transpose(sequence, (1, 0, 2)).reshape(T * B, D).astype(f32)
    wih = params["weight_ih_l0"].T.astype(f32)                       # (D, 4H)
    whh = params["weight_hh_l0"].T.astype(f32)                       # (H, 4H)
    b = (params["bias_ih_l0"].reshape(-1)
         + params["bias_hh_l0"].reshape(-1)).reshape(1, 4 * H).astype(f32)
    w1 = params["fc1_w"].T.astype(f32)                               # (H, 256)
    b1 = params["fc1_b"].reshape(1, -1).astype(f32)                  # (1, 256)
    w2 = params["fc2_w"].T.astype(f32)                               # (256, C)
    b2 = params["fc2_b"].reshape(1, -1).astype(f32)                  # (1, C)

    kernel = functools.partial(feature_sequence_kernel,
                               hidden_size=H, seq_len=T, batch=B)
    vmem = lambda: pl.BlockSpec(memory_space=pltpu.MemorySpace.VMEM)

    # Everything (~80 KB at these shapes) fits one VMEM block; latency-bound,
    # no grid needed.
    # TODO(synk): for large B, add a 'parallel' batch grid (weights resident
    # via index_map=lambda i: (0, 0)) and size TB / vmem_limit_bytes per
    # generation (v5e 16 MiB scoped default, v6e/v7x 32 MiB, v7x 64 MiB phys).
    return pl.pallas_call(
        kernel,
        out_shape=jax.ShapeDtypeStruct((B, C), f32),
        in_specs=[vmem() for _ in range(8)],
        out_specs=vmem(),
    )(x2d, wih, whh, b, w1, b1, w2, b2)


# ----------------------------------------------------------------------------
# Pure-JAX reference (correctness check)
# ----------------------------------------------------------------------------
def _ref_forward(sequence, params):
    B, T, D = sequence.shape
    H = params["weight_hh_l0"].shape[1]
    wih = params["weight_ih_l0"].T
    whh = params["weight_hh_l0"].T
    b = params["bias_ih_l0"] + params["bias_hh_l0"]
    h = jnp.zeros((B, H), jnp.float32)
    c = jnp.zeros((B, H), jnp.float32)
    for t in range(T):
        gates = sequence[:, t, :] @ wih + h @ whh + b
        i_g = jax.nn.sigmoid(gates[:, 0:H])
        f_g = jax.nn.sigmoid(gates[:, H:2 * H])
        g_g = jnp.tanh(gates[:, 2 * H:3 * H])
        o_g = jax.nn.sigmoid(gates[:, 3 * H:4 * H])
        c = f_g * c + i_g * g_g
        h = o_g * jnp.tanh(c)
    z = jax.nn.relu(h @ params["fc1_w"].T + params["fc1_b"])
    return z @ params["fc2_w"].T + params["fc2_b"]


# ----------------------------------------------------------------------------
if __name__ == "__main__":
    B, T, D, H, C = 2, 8, 32, 32, 10   # batch, seq, input_size, hidden_size, class_num

    key = jax.random.PRNGKey(0)
    ks = jax.random.split(key, 9)
    s_h = 1.0 / math.sqrt(H)
    s_c = 1.0 / math.sqrt(256)
    u = lambda k, shp, s: jax.random.uniform(k, shp, jnp.float32, -s, s)

    # PyTorch-layout parameters; gate order (i, f, g, o).
    params = dict(
        weight_ih_l0=u(ks[0], (4 * H, D), s_h),
        weight_hh_l0=u(ks[1], (4 * H, H), s_h),
        bias_ih_l0=u(ks[2], (4 * H,), s_h),
        bias_hh_l0=u(ks[3], (4 * H,), s_h),
        fc1_w=u(ks[4], (256, H), s_h), fc1_b=u(ks[5], (256,), s_h),
        fc2_w=u(ks[6], (C, 256), s_c), fc2_b=u(ks[7], (C,), s_c),
    )

    sequence = jax.random.normal(ks[8], (B, T, D), jnp.float32)

    preds = feature_sequence_processing(sequence, params)
    preds = jax.block_until_ready(preds)

    ref = _ref_forward(sequence, params)
    assert preds.shape == (B, C)
    assert jnp.allclose(preds, ref, atol=1e-3, rtol=1e-3)

    print("KERNEL_OK")
</pallas_src>

<mosaic_0001>
module attributes {stable_mosaic.version = 11 : i64} {
  func.func @feature_sequence_kernel(%arg0: memref<16x32xf32, #tpu.memory_space<vmem>>, %arg1: memref<32x128xf32, #tpu.memory_space<vmem>>, %arg2: memref<32x128xf32, #tpu.memory_space<vmem>>, %arg3: memref<1x128xf32, #tpu.memory_space<vmem>>, %arg4: memref<32x256xf32, #tpu.memory_space<vmem>>, %arg5: memref<1x256xf32, #tpu.memory_space<vmem>>, %arg6: memref<256x10xf32, #tpu.memory_space<vmem>>, %arg7: memref<1x10xf32, #tpu.memory_space<vmem>>, %arg8: memref<2x10xf32, #tpu.memory_space<vmem>>) attributes {dimension_semantics = [], scalar_prefetch = 0 : i64, scratch_operands = 0 : i64, tpu.core_type = #tpu.core_type<tc>} {
    %c0 = arith.constant 0 : index
    %c0_0 = arith.constant 0 : index
    %0 = vector.load %arg2[%c0, %c0_0] : memref<32x128xf32, #tpu.memory_space<vmem>>, vector<32x128xf32>
    %c0_1 = arith.constant 0 : index
    %c0_2 = arith.constant 0 : index
    %1 = vector.load %arg0[%c0_1, %c0_2] : memref<16x32xf32, #tpu.memory_space<vmem>>, vector<16x32xf32>
    %c0_3 = arith.constant 0 : index
    %c0_4 = arith.constant 0 : index
    %2 = vector.load %arg1[%c0_3, %c0_4] : memref<32x128xf32, #tpu.memory_space<vmem>>, vector<32x128xf32>
    %cst = arith.constant dense<0.000000e+00> : vector<16x128xf32>
    %3 = tpu.matmul %1, %2, %cst {dimension_numbers = #tpu.dot_dimension_numbers<[1], [0], [0], [1], [0, 0, 1, 1], [], []>} : vector<16x32xf32>, vector<32x128xf32>, vector<16x128xf32> -> vector<16x128xf32>
    %c0_5 = arith.constant 0 : index
    %c0_6 = arith.constant 0 : index
    %4 = vector.load %arg3[%c0_5, %c0_6] : memref<1x128xf32, #tpu.memory_space<vmem>>, vector<1x128xf32>
    %5 = vector.broadcast %4 : vector<1x128xf32> to vector<16x128xf32>
    %6 = arith.addf %3, %5 : vector<16x128xf32>
    %7 = vector.extract_strided_slice %6 {offsets = [0, 0], sizes = [2, 128], strides = [1, 1]} : vector<16x128xf32> to vector<2x128xf32>
    %8 = vector.extract_strided_slice %6 {offsets = [2, 0], sizes = [2, 128], strides = [1, 1]} : vector<16x128xf32> to vector<2x128xf32>
    %9 = vector.extract_strided_slice %6 {offsets = [4, 0], sizes = [2, 128], strides = [1, 1]} : vector<16x128xf32> to vector<2x128xf32>
    %10 = vector.extract_strided_slice %6 {offsets = [6, 0], sizes = [2, 128], strides = [1, 1]} : vector<16x128xf32> to vector<2x128xf32>
    %11 = vector.extract_strided_slice %6 {offsets = [8, 0], sizes = [2, 128], strides = [1, 1]} : vector<16x128xf32> to vector<2x128xf32>
    %12 = vector.extract_strided_slice %6 {offsets = [10, 0], sizes = [2, 128], strides = [1, 1]} : vector<16x128xf32> to vector<2x128xf32>
    %13 = vector.extract_strided_slice %6 {offsets = [12, 0], sizes = [2, 128], strides = [1, 1]} : vector<16x128xf32> to vector<2x128xf32>
    %14 = vector.extract_strided_slice %6 {offsets = [14, 0], sizes = [2, 128], strides = [1, 1]} : vector<16x128xf32> to vector<2x128xf32>
    %cst_7 = arith.constant 0.000000e+00 : f32
    %15 = vector.broadcast %cst_7 : f32 to vector<2x32xf32>
    %cst_8 = arith.constant 0.000000e+00 : f32
    %16 = vector.broadcast %cst_8 : f32 to vector<2x32xf32>
    %cst_9 = arith.constant dense<0.000000e+00> : vector<2x128xf32>
    %17 = tpu.matmul %15, %0, %cst_9 {dimension_numbers = #tpu.dot_dimension_numbers<[1], [0], [0], [1], [0, 0, 1, 1], [], []>} : vector<2x32xf32>, vector<32x128xf32>, vector<2x128xf32> -> vector<2x128xf32>
    %18 = arith.addf %7, %17 : vector<2x128xf32>
    %19 = arith.negf %18 : vector<2x128xf32>
    %20 = math.exp %19 : vector<2x128xf32>
    %cst_10 = arith.constant 1.000000e+00 : f32
    %21 = vector.broadcast %cst_10 : f32 to vector<2x128xf32>
    %22 = arith.addf %21, %20 : vector<2x128xf32>
    %23 = arith.divf %21, %22 : vector<2x128xf32>
    %24 = math.tanh %18 : vector<2x128xf32>
    %25 = vector.extract_strided_slice %23 {offsets = [0, 0], sizes = [2, 32], strides = [1, 1]} : vector<2x128xf32> to vector<2x32xf32>
    %26 = vector.extract_strided_slice %23 {offsets = [0, 32], sizes = [2, 32], strides = [1, 1]} : vector<2x128xf32> to vector<2x32xf32>
    %27 = vector.extract_strided_slice %24 {offsets = [0, 64], sizes = [2, 32], strides = [1, 1]} : vector<2x128xf32> to vector<2x32xf32>
    %28 = vector.extract_strided_slice %23 {offsets = [0, 96], sizes = [2, 32], strides = [1, 1]} : vector<2x128xf32> to vector<2x32xf32>
    %29 = arith.mulf %26, %16 : vector<2x32xf32>
    %30 = arith.mulf %25, %27 : vector<2x32xf32>
    %31 = arith.addf %29, %30 : vector<2x32xf32>
    %32 = math.tanh %31 : vector<2x32xf32>
    %33 = arith.mulf %28, %32 : vector<2x32xf32>
    %cst_11 = arith.constant dense<0.000000e+00> : vector<2x128xf32>
    %34 = tpu.matmul %33, %0, %cst_11 {dimension_numbers = #tpu.dot_dimension_numbers<[1], [0], [0], [1], [0, 0, 1, 1], [], []>} : vector<2x32xf32>, vector<32x128xf32>, vector<2x128xf32> -> vector<2x128xf32>
    %35 = arith.addf %8, %34 : vector<2x128xf32>
    %36 = arith.negf %35 : vector<2x128xf32>
    %37 = math.exp %36 : vector<2x128xf32>
    %cst_12 = arith.constant 1.000000e+00 : f32
    %38 = vector.broadcast %cst_12 : f32 to vector<2x128xf32>
    %39 = arith.addf %38, %37 : vector<2x128xf32>
    %40 = arith.divf %38, %39 : vector<2x128xf32>
    %41 = math.tanh %35 : vector<2x128xf32>
    %42 = vector.extract_strided_slice %40 {offsets = [0, 0], sizes = [2, 32], strides = [1, 1]} : vector<2x128xf32> to vector<2x32xf32>
    %43 = vector.extract_strided_slice %40 {offsets = [0, 32], sizes = [2, 32], strides = [1, 1]} : vector<2x128xf32> to vector<2x32xf32>
    %44 = vector.extract_strided_slice %41 {offsets = [0, 64], sizes = [2, 32], strides = [1, 1]} : vector<2x128xf32> to vector<2x32xf32>
    %45 = vector.extract_strided_slice %40 {offsets = [0, 96], sizes = [2, 32], strides = [1, 1]} : vector<2x128xf32> to vector<2x32xf32>
    %46 = arith.mulf %43, %31 : vector<2x32xf32>
    %47 = arith.mulf %42, %44 : vector<2x32xf32>
    %48 = arith.addf %46, %47 : vector<2x32xf32>
    %49 = math.tanh %48 : vector<2x32xf32>
    %50 = arith.mulf %45, %49 : vector<2x32xf32>
    %cst_13 = arith.constant dense<0.000000e+00> : vector<2x128xf32>
    %51 = tpu.matmul %50, %0, %cst_13 {dimension_numbers = #tpu.dot_dimension_numbers<[1], [0], [0], [1], [0, 0, 1, 1], [], []>} : vector<2x32xf32>, vector<32x128xf32>, vector<2x128xf32> -> vector<2x128xf32>
    %52 = arith.addf %9, %51 : vector<2x128xf32>
    %53 = arith.negf %52 : vector<2x128xf32>
    %54 = math.exp %53 : vector<2x128xf32>
    %cst_14 = arith.constant 1.000000e+00 : f32
    %55 = vector.broadcast %cst_14 : f32 to vector<2x128xf32>
    %56 = arith.addf %55, %54 : vector<2x128xf32>
    %57 = arith.divf %55, %56 : vector<2x128xf32>
    %58 = math.tanh %52 : vector<2x128xf32>
    %59 = vector.extract_strided_slice %57 {offsets = [0, 0], sizes = [2, 32], strides = [1, 1]} : vector<2x128xf32> to vector<2x32xf32>
    %60 = vector.extract_strided_slice %57 {offsets = [0, 32], sizes = [2, 32], strides = [1, 1]} : vector<2x128xf32> to vector<2x32xf32>
    %61 = vector.extract_strided_slice %58 {offsets = [0, 64], sizes = [2, 32], strides = [1, 1]} : vector<2x128xf32> to vector<2x32xf32>
    %62 = vector.extract_strided_slice %57 {offsets = [0, 96], sizes = [2, 32], strides = [1, 1]} : vector<2x128xf32> to vector<2x32xf32>
    %63 = arith.mulf %60, %48 : vector<2x32xf32>
    %64 = arith.mulf %59, %61 : vector<2x32xf32>
    %65 = arith.addf %63, %64 : vector<2x32xf32>
    %66 = math.tanh %65 : vector<2x32xf32>
    %67 = arith.mulf %62, %66 : vector<2x32xf32>
    %cst_15 = arith.constant dense<0.000000e+00> : vector<2x128xf32>
    %68 = tpu.matmul %67, %0, %cst_15 {dimension_numbers = #tpu.dot_dimension_numbers<[1], [0], [0], [1], [0, 0, 1, 1], [], []>} : vector<2x32xf32>, vector<32x128xf32>, vector<2x128xf32> -> vector<2x128xf32>
    %69 = arith.addf %10, %68 : vector<2x128xf32>
    %70 = arith.negf %69 : vector<2x128xf32>
    %71 = math.exp %70 : vector<2x128xf32>
    %cst_16 = arith.constant 1.000000e+00 : f32
    %72 = vector.broadcast %cst_16 : f32 to vector<2x128xf32>
    %73 = arith.addf %72, %71 : vector<2x128xf32>
    %74 = arith.divf %72, %73 : vector<2x128xf32>
    %75 = math.tanh %69 : vector<2x128xf32>
    %76 = vector.extract_strided_slice %74 {offsets = [0, 0], sizes = [2, 32], strides = [1, 1]} : vector<2x128xf32> to vector<2x32xf32>
    %77 = vector.extract_strided_slice %74 {offsets = [0, 32], sizes = [2, 32], strides = [1, 1]} : vector<2x128xf32> to vector<2x32xf32>
    %78 = vector.extract_strided_slice %75 {offsets = [0, 64], sizes = [2, 32], strides = [1, 1]} : vector<2x128xf32> to vector<2x32xf32>
    %79 = vector.extract_strided_slice %74 {offsets = [0, 96], sizes = [2, 32], strides = [1, 1]} : vector<2x128xf32> to vector<2x32xf32>
    %80 = arith.mulf %77, %65 : vector<2x32xf32>
    %81 = arith.mulf %76, %78 : vector<2x32xf32>
    %82 = arith.addf %80, %81 : vector<2x32xf32>
    %83 = math.tanh %82 : vector<2x32xf32>
    %84 = arith.mulf %79, %83 : vector<2x32xf32>
    %cst_17 = arith.constant dense<0.000000e+00> : vector<2x128xf32>
    %85 = tpu.matmul %84, %0, %cst_17 {dimension_numbers = #tpu.dot_dimension_numbers<[1], [0], [0], [1], [0, 0, 1, 1], [], []>} : vector<2x32xf32>, vector<32x128xf32>, vector<2x128xf32> -> vector<2x128xf32>
    %86 = arith.addf %11, %85 : vector<2x128xf32>
    %87 = arith.negf %86 : vector<2x128xf32>
    %88 = math.exp %87 : vector<2x128xf32>
    %cst_18 = arith.constant 1.000000e+00 : f32
    %89 = vector.broadcast %cst_18 : f32 to vector<2x128xf32>
    %90 = arith.addf %89, %88 : vector<2x128xf32>
    %91 = arith.divf %89, %90 : vector<2x128xf32>
    %92 = math.tanh %86 : vector<2x128xf32>
    %93 = vector.extract_strided_slice %91 {offsets = [0, 0], sizes = [2, 32], strides = [1, 1]} : vector<2x128xf32> to vector<2x32xf32>
    %94 = vector.extract_strided_slice %91 {offsets = [0, 32], sizes = [2, 32], strides = [1, 1]} : vector<2x128xf32> to vector<2x32xf32>
    %95 = vector.extract_strided_slice %92 {offsets = [0, 64], sizes = [2, 32], strides = [1, 1]} : vector<2x128xf32> to vector<2x32xf32>
    %96 = vector.extract_strided_slice %91 {offsets = [0, 96], sizes = [2, 32], strides = [1, 1]} : vector<2x128xf32> to vector<2x32xf32>
    %97 = arith.mulf %94, %82 : vector<2x32xf32>
    %98 = arith.mulf %93, %95 : vector<2x32xf32>
    %99 = arith.addf %97, %98 : vector<2x32xf32>
    %100 = math.tanh %99 : vector<2x32xf32>
    %101 = arith.mulf %96, %100 : vector<2x32xf32>
    %cst_19 = arith.constant dense<0.000000e+00> : vector<2x128xf32>
    %102 = tpu.matmul %101, %0, %cst_19 {dimension_numbers = #tpu.dot_dimension_numbers<[1], [0], [0], [1], [0, 0, 1, 1], [], []>} : vector<2x32xf32>, vector<32x128xf32>, vector<2x128xf32> -> vector<2x128xf32>
    %103 = arith.addf %12, %102 : vector<2x128xf32>
    %104 = arith.negf %103 : vector<2x128xf32>
    %105 = math.exp %104 : vector<2x128xf32>
    %cst_20 = arith.constant 1.000000e+00 : f32
    %106 = vector.broadcast %cst_20 : f32 to vector<2x128xf32>
    %107 = arith.addf %106, %105 : vector<2x128xf32>
    %108 = arith.divf %106, %107 : vector<2x128xf32>
    %109 = math.tanh %103 : vector<2x128xf32>
    %110 = vector.extract_strided_slice %108 {offsets = [0, 0], sizes = [2, 32], strides = [1, 1]} : vector<2x128xf32> to vector<2x32xf32>
    %111 = vector.extract_strided_slice %108 {offsets = [0, 32], sizes = [2, 32], strides = [1, 1]} : vector<2x128xf32> to vector<2x32xf32>
    %112 = vector.extract_strided_slice %109 {offsets = [0, 64], sizes = [2, 32], strides = [1, 1]} : vector<2x128xf32> to vector<2x32xf32>
    %113 = vector.extract_strided_slice %108 {offsets = [0, 96], sizes = [2, 32], strides = [1, 1]} : vector<2x128xf32> to vector<2x32xf32>
    %114 = arith.mulf %111, %99 : vector<2x32xf32>
    %115 = arith.mulf %110, %112 : vector<2x32xf32>
    %116 = arith.addf %114, %115 : vector<2x32xf32>
    %117 = math.tanh %116 : vector<2x32xf32>
    %118 = arith.mulf %113, %117 : vector<2x32xf32>
    %cst_21 = arith.constant dense<0.000000e+00> : vector<2x128xf32>
    %119 = tpu.matmul %118, %0, %cst_21 {dimension_numbers = #tpu.dot_dimension_numbers<[1], [0], [0], [1], [0, 0, 1, 1], [], []>} : vector<2x32xf32>, vector<32x128xf32>, vector<2x128xf32> -> vector<2x128xf32>
    %120 = arith.addf %13, %119 : vector<2x128xf32>
    %121 = arith.negf %120 : vector<2x128xf32>
    %122 = math.exp %121 : vector<2x128xf32>
    %cst_22 = arith.constant 1.000000e+00 : f32
    %123 = vector.broadcast %cst_22 : f32 to vector<2x128xf32>
    %124 = arith.addf %123, %122 : vector<2x128xf32>
    %125 = arith.divf %123, %124 : vector<2x128xf32>
    %126 = math.tanh %120 : vector<2x128xf32>
    %127 = vector.extract_strided_slice %125 {offsets = [0, 0], sizes = [2, 32], strides = [1, 1]} : vector<2x128xf32> to vector<2x32xf32>
    %128 = vector.extract_strided_slice %125 {offsets = [0, 32], sizes = [2, 32], strides = [1, 1]} : vector<2x128xf32> to vector<2x32xf32>
    %129 = vector.extract_strided_slice %126 {offsets = [0, 64], sizes = [2, 32], strides = [1, 1]} : vector<2x128xf32> to vector<2x32xf32>
    %130 = vector.extract_strided_slice %125 {offsets = [0, 96], sizes = [2, 32], strides = [1, 1]} : vector<2x128xf32> to vector<2x32xf32>
    %131 = arith.mulf %128, %116 : vector<2x32xf32>
    %132 = arith.mulf %127, %129 : vector<2x32xf32>
    %133 = arith.addf %131, %132 : vector<2x32xf32>
    %134 = math.tanh %133 : vector<2x32xf32>
    %135 = arith.mulf %130, %134 : vector<2x32xf32>
    %cst_23 = arith.constant dense<0.000000e+00> : vector<2x128xf32>
    %136 = tpu.matmul %135, %0, %cst_23 {dimension_numbers = #tpu.dot_dimension_numbers<[1], [0], [0], [1], [0, 0, 1, 1], [], []>} : vector<2x32xf32>, vector<32x128xf32>, vector<2x128xf32> -> vector<2x128xf32>
    %137 = arith.addf %14, %136 : vector<2x128xf32>
    %138 = arith.negf %137 : vector<2x128xf32>
    %139 = math.exp %138 : vector<2x128xf32>
    %cst_24 = arith.constant 1.000000e+00 : f32
    %140 = vector.broadcast %cst_24 : f32 to vector<2x128xf32>
    %141 = arith.addf %140, %139 : vector<2x128xf32>
    %142 = arith.divf %140, %141 : vector<2x128xf32>
    %143 = math.tanh %137 : vector<2x128xf32>
    %144 = vector.extract_strided_slice %142 {offsets = [0, 0], sizes = [2, 32], strides = [1, 1]} : vector<2x128xf32> to vector<2x32xf32>
    %145 = vector.extract_strided_slice %142 {offsets = [0, 32], sizes = [2, 32], strides = [1, 1]} : vector<2x128xf32> to vector<2x32xf32>
    %146 = vector.extract_strided_slice %143 {offsets = [0, 64], sizes = [2, 32], strides = [1, 1]} : vector<2x128xf32> to vector<2x32xf32>
    %147 = vector.extract_strided_slice %142 {offsets = [0, 96], sizes = [2, 32], strides = [1, 1]} : vector<2x128xf32> to vector<2x32xf32>
    %148 = arith.mulf %145, %133 : vector<2x32xf32>
    %149 = arith.mulf %144, %146 : vector<2x32xf32>
    %150 = arith.addf %148, %149 : vector<2x32xf32>
    %151 = math.tanh %150 : vector<2x32xf32>
    %152 = arith.mulf %147, %151 : vector<2x32xf32>
    %c0_25 = arith.constant 0 : index
    %c0_26 = arith.constant 0 : index
    %153 = vector.load %arg4[%c0_25, %c0_26] : memref<32x256xf32, #tpu.memory_space<vmem>>, vector<32x256xf32>
    %cst_27 = arith.constant dense<0.000000e+00> : vector<2x256xf32>
    %154 = tpu.matmul %152, %153, %cst_27 {dimension_numbers = #tpu.dot_dimension_numbers<[1], [0], [0], [1], [0, 0, 1, 1], [], []>} : vector<2x32xf32>, vector<32x256xf32>, vector<2x256xf32> -> vector<2x256xf32>
    %c0_28 = arith.constant 0 : index
    %c0_29 = arith.constant 0 : index
    %155 = vector.load %arg5[%c0_28, %c0_29] : memref<1x256xf32, #tpu.memory_space<vmem>>, vector<1x256xf32>
    %156 = vector.broadcast %155 : vector<1x256xf32> to vector<2x256xf32>
    %157 = arith.addf %154, %156 : vector<2x256xf32>
    %cst_30 = arith.constant 0.000000e+00 : f32
    %158 = vector.broadcast %cst_30 : f32 to vector<2x256xf32>
    %159 = arith.maximumf %157, %158 : vector<2x256xf32>
    %c0_31 = arith.constant 0 : index
    %c0_32 = arith.constant 0 : index
    %160 = vector.load %arg6[%c0_31, %c0_32] : memref<256x10xf32, #tpu.memory_space<vmem>>, vector<256x10xf32>
    %cst_33 = arith.constant dense<0.000000e+00> : vector<2x10xf32>
    %161 = tpu.matmul %159, %160, %cst_33 {dimension_numbers = #tpu.dot_dimension_numbers<[1], [0], [0], [1], [0, 0, 1, 1], [], []>} : vector<2x256xf32>, vector<256x10xf32>, vector<2x10xf32> -> vector<2x10xf32>
    %c0_34 = arith.constant 0 : index
    %c0_35 = arith.constant 0 : index
    %162 = vector.load %arg7[%c0_34, %c0_35] : memref<1x10xf32, #tpu.memory_space<vmem>>, vector<1x10xf32>
    %163 = vector.broadcast %162 : vector<1x10xf32> to vector<2x10xf32>
    %164 = arith.addf %161, %163 : vector<2x10xf32>
    %c0_36 = arith.constant 0 : index
    %c0_37 = arith.constant 0 : index
    %165 = vector.load %arg8[%c0_36, %c0_37] : memref<2x10xf32, #tpu.memory_space<vmem>>, vector<2x10xf32>
    tpu.vector_store %arg8[%c0_36, %c0_37], %164 {strides = array<i32>} : memref<2x10xf32, #tpu.memory_space<vmem>>, vector<2x10xf32>,
    return
  }
}

</mosaic_0001>

<bundles_post_ra>
// kernel: tpu_custom_call.1
= control target key start
LH: loop header
LB: loop body
LE: loop exit
PB: predicated region body
PF: predicated region fallthrough
CT: control target
= control target key end

     0   :  { %s1204_s0 = inlined_call_operand.vmem [shape: f32[16,32], index: 0, kind: input, shape index: {}]   ;;  %s1205_s1 = inlined_call_operand.vmem [shape: f32[32,128], index: 1, kind: input, shape index: {}]   ;;  %s1206_s2 = inlined_call_operand.vmem [shape: f32[32,128], index: 2, kind: input, shape index: {}]   ;;  %s1207_s3 = inlined_call_operand.vmem [shape: f32[1,128], index: 3, kind: input, shape index: {}]   ;;  %s1208_s4 = inlined_call_operand.vmem [shape: f32[32,256], index: 4, kind: input, shape index: {}]   ;;  %s1209_s5 = inlined_call_operand.vmem [shape: f32[1,256], index: 5, kind: input, shape index: {}]   ;;  %s1210_s6 = inlined_call_operand.vmem [shape: f32[256,10], index: 6, kind: input, shape index: {}]   ;;  %s1211_s7 = inlined_call_operand.vmem [shape: f32[1,10], index: 7, kind: input, shape index: {}]   ;;  %s1212_s8 = inlined_call_operand.hbm [shape: f32[2,10], index: 8, kind: output, shape index: {}]  }
   0x1   :  { %v39_v0 = vld [vmem:[%s1205_s1 + $0x18] sm:$0xff]  ;;  %v38_v1 = vld [vmem:[%s1205_s1 + $0x10] sm:$0xff]  ;;  %v37_v4 = vld [vmem:[%s1205_s1 + $0x8] sm:$0xff] }
   0x2   :  { %v949_v2 = vld [vmem:[%s1206_s2 + $0x18] sm:$0xff]  ;;  %63 = vmatpush.msra.mxu2 %v39_v0  ;;  %v955_v3 = vld [vmem:[%s1206_s2 + $0x10] sm:$0xff]  ;;  %v963_v5 = vld [vmem:[%s1206_s2 + $0x8] sm:$0xff] }
   0x3   :  { %89 = vmatpush.msra.mxu3 %v949_v2  ;;  %498 = vmatpush.msra.mxu0 %v949_v2  ;;  %v36_v6 = vld [vmem:[%s1205_s1] sm:$0xff] }
   0x4   :  { %568 = vmatpush.msra.mxu1 %v949_v2  ;;  %64 = vmatpush.msra.mxu2 %v38_v1  ;;  %v974_v7 = vld [vmem:[%s1206_s2] sm:$0xff] }
   0x5   :  { %90 = vmatpush.msra.mxu3 %v955_v3  ;;  %499 = vmatpush.msra.mxu0 %v955_v3 }
   0x6   :  { %569 = vmatpush.msra.mxu1 %v955_v3 }
   0x7   :  { %13 = vsyncpa [#allocation3], 0  ;;  %65 = vmatpush.msra.mxu2 %v37_v4  ;;  %91 = vmatpush.msra.mxu3 %v963_v5  ;;  %v34_v8 = vld [vmem:[%s1204_s0] sm:$0xff]  ;;  %vm44_vm0 = vcmask 261120   ;;  %v891_v9 = vmov 0.0   ;;  %s892_s23 = smov 64  }
   0x8   :  { %500 = vmatpush.msra.mxu0 %v963_v5  ;;  %570 = vmatpush.msra.mxu1 %v963_v5  ;;  %v1007_v10 = vld [vmem:[%s1207_s3] ss:$0 sm:$0xff]  ;;  %s893_s3 = smov 32   ;;  %v35_v35 = vld [vmem:[%s1204_s0 + $0x8] sm:$0xff] }
   0x9   :  { %66 = vmatpush.msra.mxu2 %v36_v6  ;;  %92 = vmatpush.msra.mxu3 %v974_v7 }
   0xa   :  { %776 = vmatmul.msk.f32.vlgmr.msra.gmra.mxu2 %vm44_vm0, %v34_v8  ;;  %93 = vmatmul.f32.vlgmr.msra.gmra.mxu3 %v891_v9 }
   0xb   :  { %152 = vmatpush.msrb.mxu2 %v949_v2  ;;  %222 = vmatpush.msrb.mxu3 %v949_v2 }
   0xc   :  { %501 = vmatpush.msra.mxu0 %v974_v7  ;;  %571 = vmatpush.msra.mxu1 %v974_v7 }
   0xd   :  { %153 = vmatpush.msrb.mxu2 %v955_v3  ;;  %223 = vmatpush.msrb.mxu3 %v955_v3 }
   0xf   :  { %154 = vmatpush.msrb.mxu2 %v963_v5  ;;  %224 = vmatpush.msrb.mxu3 %v963_v5 }
  0x11   :  { %155 = vmatpush.msrb.mxu2 %v974_v7  ;;  %225 = vmatpush.msrb.mxu3 %v974_v7 }
  0x12   :  { %777 = vmatmul.msk.f32.gmra.mxu2 %vm44_vm0, %v35_v35 }
  0x13   :  { %292 = vmatpush.msra.mxu3 %v949_v2  ;;  %362 = vmatpush.msra.mxu2 %v949_v2 }
  0x15   :  { %293 = vmatpush.msra.mxu3 %v955_v3  ;;  %363 = vmatpush.msra.mxu2 %v955_v3 }
  0x17   :  { %294 = vmatpush.msra.mxu3 %v963_v5  ;;  %364 = vmatpush.msra.mxu2 %v963_v5 }
  0x19   :  { %295 = vmatpush.msra.mxu3 %v974_v7  ;;  %365 = vmatpush.msra.mxu2 %v974_v7 }
  0x8d   :  { %v68_v11 = vpop.f32.mrf.mxu2  ;;  %v94_v12 = vpop.f32.mrf.mxu3 }
  0x8e   :  { %v1010_v13 = vadd.f32 %v1007_v10, %v68_v11 }
  0x90   :  { %v97_v14 = vadd.f32 %v94_v12, %v1010_v13 }
  0x92   :  { %801 = vtanh.f32 %v97_v14  ;;  %v778_v16 = vmul.f32 -1.442695, %v97_v14 }
  0x94   :  { %803 = vpow2.f32 %v778_v16 }
  0x95   :  { %v1022_v39 = vpop.f32.mrf.mxu2 }
  0x98   :  { %v802_v15 = vpop.eup %801 }
  0x99   :  { %120 = vrot.lane.b32.xlu0 %v802_v15, %s892_s23 }
  0x9a   :  { %v804_v17 = vpop.eup %803 }
  0x9b   :  { %v101_v18 = vadd.f32 1.0, %v804_v17 }
  0x9d   :  { %805 = vrcp.f32 %v101_v18  ;;  %v113_v24 = vand.u32 2147483648, %v101_v18  ;;  %vm107_vm2 = vweird.f32 %v101_v18  ;;  %v111_v25 = vand.u32 2147483647, %v101_v18 }
  0x9f   :  { %v114_v27 = vor.u32 1.1754944e-38, %v113_v24  ;;  %vm112_vm4 = vcmp.eq.f32.partialorder %v111_v25, 8.507059e+37 }
  0xa3   :  { %v806_v19 = vpop.eup %805 }
  0xa4   :  { %v103_v20 = vmul.f32 %v806_v19, %v101_v18  ;;  %vm108_vm1 = vweird.f32 %v806_v19 }
  0xa5   :  { %vm109_vm3 = vmor %vm107_vm2, %vm108_vm1 }
  0xa6   :  { %v104_v21 = vsub.f32 1.0, %v103_v20 }
  0xa8   :  { %v105_v22 = vmul.f32 %v806_v19, %v104_v21 }
  0xaa   :  { %v106_v23 = vadd.f32 %v806_v19, %v105_v22 }
  0xac   :  { %v110_v26 = vsel %vm109_vm3, %v806_v19, %v106_v23 }
  0xad   :  { %v115_v29 = vsel %vm112_vm4, %v114_v27, %v110_v26 }
  0xae   :  { %v118_v31 = vmul.f32 0.0, %v115_v29 }
 0x10b   :  { %v121_v28 = vpop.permute.xlu0 %120 }
 0x10c   :  { %v123_v30 = vmul.f32 %v121_v28, %v115_v29 }
 0x10e   :  { %125 = vrot.lane.b32.xlu0 %v123_v30, %s893_s3 }
 0x180   :  { %v126_v32 = vpop.permute.xlu0 %125 }
 0x181   :  { %v128_v33 = vadd.f32 %v126_v32, %v118_v31 }
 0x183   :  { %807 = vtanh.f32 %v128_v33  ;;  %v185_v59 = vrot.slane %v128_v33, 6 }
 0x189   :  { %v808_v34 = vpop.eup %807 }
 0x18a   :  { %131 = vrot.lane.b32.xlu1 %v808_v34, %s892_s23 }
 0x1fc   :  { %v132_v36 = vpop.permute.xlu1 %131 }
 0x1fd   :  { %v134_v37 = vmul.f32 %v132_v36, %v115_v29 }
 0x1ff   :  { %136 = vrot.lane.b32.xlu1 %v134_v37, %s893_s3 }
 0x271   :  { %v137_v38 = vpop.permute.xlu1 %136 }
 0x272   :  { %779 = vmatmul.msk.f32.vlgmr.msrb.gmra.mxu2 %vm44_vm0, %v137_v38 }
 0x2f5   :  { %v157_v40 = vpop.f32.mrf.mxu2 }
 0x2f6   :  { %v161_v41 = vrot.slane %v157_v40, 6 }
 0x2f8   :  { %v163_v42 = vadd.f32 %v161_v41, %v1010_v13 }
 0x2fa   :  { %809 = vtanh.f32 %v163_v42  ;;  %v780_v44 = vmul.f32 -1.442695, %v163_v42 }
 0x2fc   :  { %811 = vpow2.f32 %v780_v44 }
 0x300   :  { %v810_v43 = vpop.eup %809 }
 0x301   :  { %189 = vrot.lane.b32.xlu2 %v810_v43, %s892_s23 }
 0x302   :  { %v812_v45 = vpop.eup %811 }
 0x303   :  { %v167_v46 = vadd.f32 1.0, %v812_v45 }
 0x305   :  { %813 = vrcp.f32 %v167_v46  ;;  %v179_v52 = vand.u32 2147483648, %v167_v46  ;;  %vm173_vm6 = vweird.f32 %v167_v46  ;;  %v177_v53 = vand.u32 2147483647, %v167_v46 }
 0x307   :  { %v180_v55 = vor.u32 1.1754944e-38, %v179_v52  ;;  %vm178_vm8 = vcmp.eq.f32.partialorder %v177_v53, 8.507059e+37 }
 0x30b   :  { %v814_v47 = vpop.eup %813 }
 0x30c   :  { %v169_v48 = vmul.f32 %v814_v47, %v167_v46  ;;  %vm174_vm5 = vweird.f32 %v814_v47 }
 0x30d   :  { %vm175_vm7 = vmor %vm173_vm6, %vm174_vm5 }
 0x30e   :  { %v170_v49 = vsub.f32 1.0, %v169_v48 }
 0x310   :  { %v171_v50 = vmul.f32 %v814_v47, %v170_v49 }
 0x312   :  { %v172_v51 = vadd.f32 %v814_v47, %v171_v50 }
 0x314   :  { %v176_v54 = vsel %vm175_vm7, %v814_v47, %v172_v51 }
 0x315   :  { %v181_v57 = vsel %vm178_vm8, %v180_v55, %v176_v54 }
 0x316   :  { %v187_v60 = vmul.f32 %v185_v59, %v181_v57 }
 0x35b   :  { %v190_v56 = vpop.permute.xlu2 %189 }
 0x35c   :  { %v192_v58 = vmul.f32 %v190_v56, %v181_v57 }
 0x35e   :  { %194 = vrot.lane.b32.xlu2 %v192_v58, %s893_s3 }
 0x3b8   :  { %v195_v61 = vpop.permute.xlu2 %194 }
 0x3b9   :  { %v197_v62 = vadd.f32 %v195_v61, %v187_v60 }
 0x3bb   :  { %815 = vtanh.f32 %v197_v62  ;;  %v255_v25 = vrot.slane %v197_v62, 6  ;;  %v1048_v62 = vadd.f32 %v1007_v10, %v1022_v39 }
 0x3c1   :  { %v816_v63 = vpop.eup %815 }
 0x3c2   :  { %200 = vrot.lane.b32.xlu0 %v816_v63, %s892_s23 }
 0x434   :  { %v201_v0 = vpop.permute.xlu0 %200 }
 0x435   :  { %v203_v1 = vmul.f32 %v201_v0, %v181_v57 }
 0x437   :  { %v205_v4 = vrot.slane %v203_v1, 2 }
 0x439   :  { %206 = vrot.lane.b32.xlu1 %v205_v4, %s893_s3 }
 0x4ab   :  { %v207_v6 = vpop.permute.xlu1 %206 }
 0x4ac   :  { %781 = vmatmul.msk.f32.vlgmr.msrb.gmra.mxu3 %vm44_vm0, %v207_v6 }
 0x4ad   :  { %428 = vmatpush.msrb.mxu3 %v949_v2 }
 0x4af   :  { %429 = vmatpush.msrb.mxu3 %v955_v3 }
 0x4b1   :  { %430 = vmatpush.msrb.mxu3 %v963_v5 }
 0x4b3   :  { %431 = vmatpush.msrb.mxu3 %v974_v7 }
 0x52f   :  { %v227_v8 = vpop.f32.mrf.mxu3 }
 0x530   :  { %v231_v9 = vrot.slane %v227_v8, 4 }
 0x532   :  { %v233_v11 = vadd.f32 %v231_v9, %v1010_v13 }
 0x534   :  { %817 = vtanh.f32 %v233_v11  ;;  %v782_v14 = vmul.f32 -1.442695, %v233_v11 }
 0x536   :  { %819 = vpow2.f32 %v782_v14 }
 0x53a   :  { %v818_v12 = vpop.eup %817 }
 0x53b   :  { %259 = vrot.lane.b32.xlu2 %v818_v12, %s892_s23 }
 0x53c   :  { %v820_v15 = vpop.eup %819 }
 0x53d   :  { %v237_v16 = vadd.f32 1.0, %v820_v15 }
 0x53f   :  { %821 = vrcp.f32 %v237_v16  ;;  %v249_v7 = vand.u32 2147483648, %v237_v16  ;;  %vm243_vm10 = vweird.f32 %v237_v16  ;;  %v247_v19 = vand.u32 2147483647, %v237_v16 }
 0x541   :  { %v250_v21 = vor.u32 1.1754944e-38, %v249_v7  ;;  %vm248_vm12 = vcmp.eq.f32.partialorder %v247_v19, 8.507059e+37 }
 0x545   :  { %v822_v2 = vpop.eup %821 }
 0x546   :  { %v239_v17 = vmul.f32 %v822_v2, %v237_v16  ;;  %vm244_vm9 = vweird.f32 %v822_v2 }
 0x547   :  { %vm245_vm11 = vmor %vm243_vm10, %vm244_vm9 }
 0x548   :  { %v240_v3 = vsub.f32 1.0, %v239_v17 }
 0x54a   :  { %v241_v18 = vmul.f32 %v822_v2, %v240_v3 }
 0x54c   :  { %v242_v5 = vadd.f32 %v822_v2, %v241_v18 }
 0x54e   :  { %v246_v20 = vsel %vm245_vm11, %v822_v2, %v242_v5 }
 0x54f   :  { %v251_v23 = vsel %vm248_vm12, %v250_v21, %v246_v20 }
 0x550   :  { %v257_v26 = vmul.f32 %v255_v25, %v251_v23 }
 0x595   :  { %v260_v22 = vpop.permute.xlu2 %259 }
 0x596   :  { %v262_v24 = vmul.f32 %v260_v22, %v251_v23 }
 0x598   :  { %264 = vrot.lane.b32.xlu0 %v262_v24, %s893_s3 }
 0x60a   :  { %v265_v27 = vpop.permute.xlu0 %264 }
 0x60b   :  { %v267_v28 = vadd.f32 %v265_v27, %v257_v26 }
 0x60d   :  { %823 = vtanh.f32 %v267_v28  ;;  %v325_v53 = vrot.slane %v267_v28, 6 }
 0x613   :  { %v824_v29 = vpop.eup %823 }
 0x614   :  { %270 = vrot.lane.b32.xlu1 %v824_v29, %s892_s23 }
 0x686   :  { %v271_v30 = vpop.permute.xlu1 %270 }
 0x687   :  { %v273_v31 = vmul.f32 %v271_v30, %v251_v23 }
 0x689   :  { %v275_v32 = vrot.slane %v273_v31, 4 }
 0x68b   :  { %276 = vrot.lane.b32.xlu2 %v275_v32, %s893_s3 }
 0x6e5   :  { %v277_v33 = vpop.permute.xlu2 %276 }
 0x6e6   :  { %783 = vmatmul.msk.f32.vlgmr.msra.gmra.mxu3 %vm44_vm0, %v277_v33 }
 0x769   :  { %v297_v34 = vpop.f32.mrf.mxu3 }
 0x76a   :  { %v301_v35 = vrot.slane %v297_v34, 2 }
 0x76c   :  { %v303_v36 = vadd.f32 %v301_v35, %v1010_v13 }
 0x76e   :  { %825 = vtanh.f32 %v303_v36  ;;  %v784_v38 = vmul.f32 -1.442695, %v303_v36 }
 0x770   :  { %827 = vpow2.f32 %v784_v38 }
 0x774   :  { %v826_v37 = vpop.eup %825 }
 0x775   :  { %329 = vrot.lane.b32.xlu0 %v826_v37, %s892_s23 }
 0x776   :  { %v828_v40 = vpop.eup %827 }
 0x777   :  { %v307_v41 = vadd.f32 1.0, %v828_v40 }
 0x779   :  { %829 = vrcp.f32 %v307_v41  ;;  %v319_v47 = vand.u32 2147483648, %v307_v41  ;;  %vm313_vm14 = vweird.f32 %v307_v41  ;;  %v317_v48 = vand.u32 2147483647, %v307_v41 }
 0x77b   :  { %v320_v49 = vor.u32 1.1754944e-38, %v319_v47  ;;  %vm318_vm1 = vcmp.eq.f32.partialorder %v317_v48, 8.507059e+37 }
 0x77f   :  { %v830_v42 = vpop.eup %829 }
 0x780   :  { %v309_v43 = vmul.f32 %v830_v42, %v307_v41  ;;  %vm314_vm13 = vweird.f32 %v830_v42 }
 0x781   :  { %vm315_vm15 = vmor %vm313_vm14, %vm314_vm13 }
 0x782   :  { %v310_v44 = vsub.f32 1.0, %v309_v43 }
 0x784   :  { %v311_v45 = vmul.f32 %v830_v42, %v310_v44 }
 0x786   :  { %v312_v46 = vadd.f32 %v830_v42, %v311_v45 }
 0x788   :  { %v316_v13 = vsel %vm315_vm15, %v830_v42, %v312_v46 }
 0x789   :  { %v321_v51 = vsel %vm318_vm1, %v320_v49, %v316_v13 }
 0x78a   :  { %v327_v54 = vmul.f32 %v325_v53, %v321_v51 }
 0x7e7   :  { %v330_v50 = vpop.permute.xlu0 %329 }
 0x7e8   :  { %v332_v52 = vmul.f32 %v330_v50, %v321_v51 }
 0x7ea   :  { %334 = vrot.lane.b32.xlu1 %v332_v52, %s893_s3 }
 0x85c   :  { %v335_v55 = vpop.permute.xlu1 %334 }
 0x85d   :  { %v337_v56 = vadd.f32 %v335_v55, %v327_v54 }
 0x85f   :  { %831 = vtanh.f32 %v337_v56  ;;  %v392_v5 = vrot.slane %v337_v56, 6 }
 0x865   :  { %v832_v57 = vpop.eup %831 }
 0x866   :  { %340 = vrot.lane.b32.xlu2 %v832_v57, %s892_s23 }
 0x8c0   :  { %v341_v58 = vpop.permute.xlu2 %340 }
 0x8c1   :  { %v343_v59 = vmul.f32 %v341_v58, %v321_v51 }
 0x8c3   :  { %v345_v60 = vrot.slane %v343_v59, 6 }
 0x8c5   :  { %346 = vrot.lane.b32.xlu0 %v345_v60, %s893_s3 }
 0x937   :  { %v347_v61 = vpop.permute.xlu0 %346 }
 0x938   :  { %785 = vmatmul.msk.f32.vlgmr.msra.gmra.mxu2 %vm44_vm0, %v347_v61 }
 0x9bb   :  { %v367_v63 = vpop.f32.mrf.mxu2 }
 0x9bc   :  { %v370_v0 = vadd.f32 %v367_v63, %v1048_v62 }
 0x9be   :  { %833 = vtanh.f32 %v370_v0  ;;  %v786_v4 = vmul.f32 -1.442695, %v370_v0 }
 0x9c0   :  { %835 = vpow2.f32 %v786_v4 }
 0x9c4   :  { %v834_v1 = vpop.eup %833 }
 0x9c5   :  { %396 = vrot.lane.b32.xlu1 %v834_v1, %s892_s23 }
 0x9c6   :  { %v836_v6 = vpop.eup %835 }
 0x9c7   :  { %v374_v8 = vadd.f32 1.0, %v836_v6 }
 0x9c9   :  { %837 = vrcp.f32 %v374_v8  ;;  %v386_v10 = vand.u32 2147483648, %v374_v8  ;;  %vm380_vm3 = vweird.f32 %v374_v8  ;;  %v384_v39 = vand.u32 2147483647, %v374_v8 }
 0x9cb   :  { %v387_v2 = vor.u32 1.1754944e-38, %v386_v10  ;;  %vm385_vm5 = vcmp.eq.f32.partialorder %v384_v39, 8.507059e+37 }
 0x9cf   :  { %v838_v9 = vpop.eup %837 }
 0x9d0   :  { %v376_v11 = vmul.f32 %v838_v9, %v374_v8  ;;  %vm381_vm2 = vweird.f32 %v838_v9 }
 0x9d1   :  { %vm382_vm4 = vmor %vm380_vm3, %vm381_vm2 }
 0x9d2   :  { %v377_v12 = vsub.f32 1.0, %v376_v11 }
 0x9d4   :  { %v378_v14 = vmul.f32 %v838_v9, %v377_v12 }
 0x9d6   :  { %v379_v15 = vadd.f32 %v838_v9, %v378_v14 }
 0x9d8   :  { %v383_v16 = vsel %vm382_vm4, %v838_v9, %v379_v15 }
 0x9d9   :  { %v388_v3 = vsel %vm385_vm5, %v387_v2, %v383_v16 }
 0x9da   :  { %v394_v7 = vmul.f32 %v392_v5, %v388_v3 }
 0xa37   :  { %v397_v17 = vpop.permute.xlu1 %396 }
 0xa38   :  { %v399_v18 = vmul.f32 %v397_v17, %v388_v3 }
 0xa3a   :  { %401 = vrot.lane.b32.xlu2 %v399_v18, %s893_s3 }
 0xa94   :  { %v402_v19 = vpop.permute.xlu2 %401 }
 0xa95   :  { %v404_v20 = vadd.f32 %v402_v19, %v394_v7 }
 0xa97   :  { %839 = vtanh.f32 %v404_v20  ;;  %v461_v45 = vrot.slane %v404_v20, 6 }
 0xa9d   :  { %v840_v21 = vpop.eup %839 }
 0xa9e   :  { %407 = vrot.lane.b32.xlu0 %v840_v21, %s892_s23 }
 0xb10   :  { %v408_v22 = vpop.permute.xlu0 %407 }
 0xb11   :  { %v410_v23 = vmul.f32 %v408_v22, %v388_v3 }
 0xb13   :  { %412 = vrot.lane.b32.xlu1 %v410_v23, %s893_s3 }
 0xb85   :  { %v413_v24 = vpop.permute.xlu1 %412 }
 0xb86   :  { %787 = vmatmul.msk.f32.vlgmr.msrb.gmra.mxu3 %vm44_vm0, %v413_v24 }
 0xc09   :  { %v433_v25 = vpop.f32.mrf.mxu3 }
 0xc0a   :  { %v437_v26 = vrot.slane %v433_v25, 6 }
 0xc0c   :  { %v439_v27 = vadd.f32 %v437_v26, %v1048_v62 }
 0xc0e   :  { %841 = vtanh.f32 %v439_v27  ;;  %v788_v29 = vmul.f32 -1.442695, %v439_v27 }
 0xc10   :  { %843 = vpow2.f32 %v788_v29 }
 0xc14   :  { %v842_v28 = vpop.eup %841 }
 0xc15   :  { %465 = vrot.lane.b32.xlu2 %v842_v28, %s892_s23 }
 0xc16   :  { %v844_v30 = vpop.eup %843 }
 0xc17   :  { %v443_v31 = vadd.f32 1.0, %v844_v30 }
 0xc19   :  { %845 = vrcp.f32 %v443_v31  ;;  %v455_v37 = vand.u32 2147483648, %v443_v31  ;;  %vm449_vm7 = vweird.f32 %v443_v31  ;;  %v453_v38 = vand.u32 2147483647, %v443_v31 }
 0xc1b   :  { %v456_v41 = vor.u32 1.1754944e-38, %v455_v37  ;;  %vm454_vm9 = vcmp.eq.f32.partialorder %v453_v38, 8.507059e+37 }
 0xc1f   :  { %v846_v32 = vpop.eup %845 }
 0xc20   :  { %v445_v33 = vmul.f32 %v846_v32, %v443_v31  ;;  %vm450_vm6 = vweird.f32 %v846_v32 }
 0xc21   :  { %vm451_vm8 = vmor %vm449_vm7, %vm450_vm6 }
 0xc22   :  { %v446_v34 = vsub.f32 1.0, %v445_v33 }
 0xc24   :  { %v447_v35 = vmul.f32 %v846_v32, %v446_v34 }
 0xc26   :  { %v448_v36 = vadd.f32 %v846_v32, %v447_v35 }
 0xc28   :  { %v452_v40 = vsel %vm451_vm8, %v846_v32, %v448_v36 }
 0xc29   :  { %v457_v43 = vsel %vm454_vm9, %v456_v41, %v452_v40 }
 0xc2a   :  { %v463_v46 = vmul.f32 %v461_v45, %v457_v43  ;;  %v625_v45 = vld [vmem:[%s1208_s4 + $0x28] sm:$0xff] }
 0xc6f   :  { %v466_v42 = vpop.permute.xlu2 %465 }
 0xc70   :  { %v468_v44 = vmul.f32 %v466_v42, %v457_v43  ;;  %v626_v42 = vld [vmem:[%s1208_s4 + $0x30] sm:$0xff] }
 0xc71   :  { %652 = vmatpush.msrb.mxu2 %v626_v42 }
 0xc72   :  { %470 = vrot.lane.b32.xlu0 %v468_v44, %s893_s3  ;;  %v624_v44 = vld [vmem:[%s1208_s4 + $0x20] sm:$0xff] }
 0xc73   :  { %653 = vmatpush.msrb.mxu2 %v624_v44 }
 0xce4   :  { %v471_v47 = vpop.permute.xlu0 %470 }
 0xce5   :  { %v473_v48 = vadd.f32 %v471_v47, %v463_v46  ;;  %v622_v46 = vld [vmem:[%s1208_s4 + $0x10] sm:$0xff]  ;;  %v623_v47 = vld [vmem:[%s1208_s4 + $0x18] sm:$0xff] }
 0xce6   :  { %654 = vmatpush.msrb.mxu2 %v622_v46 }
 0xce7   :  { %847 = vtanh.f32 %v473_v48  ;;  %v531_v15 = vrot.slane %v473_v48, 6  ;;  %v620_v48 = vld [vmem:[%s1208_s4] sm:$0xff] }
 0xce8   :  { %655 = vmatpush.msrb.mxu2 %v620_v48 }
 0xced   :  { %v848_v13 = vpop.eup %847 }
 0xcee   :  { %476 = vrot.lane.b32.xlu1 %v848_v13, %s892_s23  ;;  %v621_v13 = vld [vmem:[%s1208_s4 + $0x8] sm:$0xff] }
 0xd60   :  { %v477_v49 = vpop.permute.xlu1 %476 }
 0xd61   :  { %v479_v50 = vmul.f32 %v477_v49, %v457_v43  ;;  %v627_v43 = vld [vmem:[%s1208_s4 + $0x38] sm:$0xff] }
 0xd62   :  { %672 = vmatpush.msra.mxu3 %v627_v43 }
 0xd63   :  { %v481_v51 = vrot.slane %v479_v50, 2 }
 0xd64   :  { %673 = vmatpush.msra.mxu3 %v625_v45 }
 0xd65   :  { %482 = vrot.lane.b32.xlu2 %v481_v51, %s893_s3 }
 0xd66   :  { %674 = vmatpush.msra.mxu3 %v623_v47 }
 0xd68   :  { %675 = vmatpush.msra.mxu3 %v621_v13 }
 0xdbf   :  { %v483_v52 = vpop.permute.xlu2 %482 }
 0xdc0   :  { %789 = vmatmul.msk.f32.vlgmr.msra.gmra.mxu0 %vm44_vm0, %v483_v52  ;;  %v697_v52 = vld [vmem:[%s1210_s6 + $0x78] sm:$0xff] }
 0xdc1   :  { %718 = vmatpush.msrb.mxu0 %v697_v52 }
 0xe3d   :  { %v503_v53 = vpop.f32.mrf.mxu0 }
 0xe3e   :  { %v507_v54 = vrot.slane %v503_v53, 4  ;;  %v713_v53 = vld [vmem:[%s1210_s6 + $0xf8] sm:$0xff] }
 0xe3f   :  { %738 = vmatpush.msrb.mxu1 %v713_v53 }
 0xe40   :  { %v509_v55 = vadd.f32 %v507_v54, %v1048_v62  ;;  %v696_v54 = vld [vmem:[%s1210_s6 + $0x70] sm:$0xff] }
 0xe41   :  { %719 = vmatpush.msrb.mxu0 %v696_v54 }
 0xe42   :  { %849 = vtanh.f32 %v509_v55  ;;  %v790_v57 = vmul.f32 -1.442695, %v509_v55  ;;  %v712_v55 = vld [vmem:[%s1210_s6 + $0xf0] sm:$0xff] }
 0xe43   :  { %739 = vmatpush.msrb.mxu1 %v712_v55 }
 0xe44   :  { %851 = vpow2.f32 %v790_v57  ;;  %v711_v57 = vld [vmem:[%s1210_s6 + $0xe8] sm:$0xff] }
 0xe45   :  { %740 = vmatpush.msrb.mxu1 %v711_v57 }
 0xe48   :  { %v850_v56 = vpop.eup %849 }
 0xe49   :  { %535 = vrot.lane.b32.xlu0 %v850_v56, %s892_s23  ;;  %v695_v56 = vld [vmem:[%s1210_s6 + $0x68] sm:$0xff] }
 0xe4a   :  { %v852_v58 = vpop.eup %851  ;;  %720 = vmatpush.msrb.mxu0 %v695_v56 }
 0xe4b   :  { %v513_v59 = vadd.f32 1.0, %v852_v58  ;;  %v694_v58 = vld [vmem:[%s1210_s6 + $0x60] sm:$0xff] }
 0xe4c   :  { %721 = vmatpush.msrb.mxu0 %v694_v58 }
 0xe4d   :  { %853 = vrcp.f32 %v513_v59  ;;  %v525_v4 = vand.u32 2147483648, %v513_v59  ;;  %vm519_vm11 = vweird.f32 %v513_v59  ;;  %v523_v6 = vand.u32 2147483647, %v513_v59 }
 0xe4f   :  { %v526_v9 = vor.u32 1.1754944e-38, %v525_v4  ;;  %vm524_vm13 = vcmp.eq.f32.partialorder %v523_v6, 8.507059e+37  ;;  %v707_v4 = vld [vmem:[%s1210_s6 + $0xc8] sm:$0xff]  ;;  %v690_v6 = vld [vmem:[%s1210_s6 + $0x40] sm:$0xff] }
 0xe53   :  { %v854_v60 = vpop.eup %853 }
 0xe54   :  { %v515_v61 = vmul.f32 %v854_v60, %v513_v59  ;;  %vm520_vm10 = vweird.f32 %v854_v60  ;;  %v710_v59 = vld [vmem:[%s1210_s6 + $0xe0] sm:$0xff] }
 0xe55   :  { %vm521_vm12 = vmor %vm519_vm11, %vm520_vm10  ;;  %741 = vmatpush.msrb.mxu1 %v710_v59 }
 0xe56   :  { %v516_v63 = vsub.f32 1.0, %v515_v61  ;;  %v709_v61 = vld [vmem:[%s1210_s6 + $0xd8] sm:$0xff] }
 0xe57   :  { %742 = vmatpush.msrb.mxu1 %v709_v61 }
 0xe58   :  { %v517_v0 = vmul.f32 %v854_v60, %v516_v63  ;;  %v692_v63 = vld [vmem:[%s1210_s6 + $0x50] sm:$0xff] }
 0xe5a   :  { %v518_v1 = vadd.f32 %v854_v60, %v517_v0  ;;  %v708_v0 = vld [vmem:[%s1210_s6 + $0xd0] sm:$0xff] }
 0xe5b   :  { %743 = vmatpush.msrb.mxu1 %v708_v0 }
 0xe5c   :  { %v522_v8 = vsel %vm521_vm12, %v854_v60, %v518_v1  ;;  %v693_v60 = vld [vmem:[%s1210_s6 + $0x58] sm:$0xff]  ;;  %v691_v1 = vld [vmem:[%s1210_s6 + $0x48] sm:$0xff] }
 0xe5d   :  { %v527_v12 = vsel %vm524_vm13, %v526_v9, %v522_v8  ;;  %722 = vmatpush.msrb.mxu0 %v693_v60  ;;  %v706_v8 = vld [vmem:[%s1210_s6 + $0xc0] sm:$0xff]  ;;  %744 = vmatpush.msrb.mxu1 %v707_v4  ;;  %v689_v9 = vld [vmem:[%s1210_s6 + $0x38] sm:$0xff] }
 0xe5e   :  { %v533_v10 = vmul.f32 %v531_v15, %v527_v12  ;;  %v687_v15 = vld [vmem:[%s1210_s6 + $0x28] sm:$0xff] }
 0xe5f   :  { %723 = vmatpush.msrb.mxu0 %v692_v63  ;;  %745 = vmatpush.msrb.mxu1 %v706_v8 }
 0xe61   :  { %724 = vmatpush.msrb.mxu0 %v691_v1 }
 0xe63   :  { %725 = vmatpush.msrb.mxu0 %v690_v6 }
 0xe65   :  { %726 = vmatpush.msrb.mxu0 %v689_v9 }
 0xebb   :  { %v536_v11 = vpop.permute.xlu0 %535 }
 0xebc   :  { %v538_v14 = vmul.f32 %v536_v11, %v527_v12  ;;  %v705_v11 = vld [vmem:[%s1210_s6 + $0xb8] sm:$0xff] }
 0xebd   :  { %746 = vmatpush.msrb.mxu1 %v705_v11 }
 0xebe   :  { %540 = vrot.lane.b32.xlu1 %v538_v14, %s893_s3  ;;  %v704_v14 = vld [vmem:[%s1210_s6 + $0xb0] sm:$0xff] }
 0xebf   :  { %747 = vmatpush.msrb.mxu1 %v704_v14 }
 0xf30   :  { %v541_v39 = vpop.permute.xlu1 %540 }
 0xf31   :  { %v543_v16 = vadd.f32 %v541_v39, %v533_v10  ;;  %v703_v10 = vld [vmem:[%s1210_s6 + $0xa8] sm:$0xff]  ;;  %v686_v39 = vld [vmem:[%s1210_s6 + $0x20] sm:$0xff] }
 0xf32   :  { %748 = vmatpush.msrb.mxu1 %v703_v10 }
 0xf33   :  { %855 = vtanh.f32 %v543_v16  ;;  %v601_v36 = vrot.slane %v543_v16, 6  ;;  %v702_v16 = vld [vmem:[%s1210_s6 + $0xa0] sm:$0xff] }
 0xf34   :  { %749 = vmatpush.msrb.mxu1 %v702_v16 }
 0xf39   :  { %v856_v2 = vpop.eup %855 }
 0xf3a   :  { %546 = vrot.lane.b32.xlu2 %v856_v2, %s892_s23  ;;  %v685_v2 = vld [vmem:[%s1210_s6 + $0x18] sm:$0xff] }
 0xf94   :  { %v547_v17 = vpop.permute.xlu2 %546 }
 0xf95   :  { %v549_v3 = vmul.f32 %v547_v17, %v527_v12  ;;  %v688_v12 = vld [vmem:[%s1210_s6 + $0x30] sm:$0xff]  ;;  %v701_v17 = vld [vmem:[%s1210_s6 + $0x98] sm:$0xff] }
 0xf96   :  { %727 = vmatpush.msrb.mxu0 %v688_v12  ;;  %750 = vmatpush.msrb.mxu1 %v701_v17 }
 0xf97   :  { %v551_v18 = vrot.slane %v549_v3, 4 }
 0xf98   :  { %728 = vmatpush.msrb.mxu0 %v687_v15 }
 0xf99   :  { %552 = vrot.lane.b32.xlu0 %v551_v18, %s893_s3  ;;  %v684_v18 = vld [vmem:[%s1210_s6 + $0x10] sm:$0xff] }
 0xf9a   :  { %729 = vmatpush.msrb.mxu0 %v686_v39 }
 0xf9c   :  { %730 = vmatpush.msrb.mxu0 %v685_v2 }
 0xf9e   :  { %731 = vmatpush.msrb.mxu0 %v684_v18 }
0x100b   :  { %v553_v5 = vpop.permute.xlu0 %552 }
0x100c   :  { %791 = vmatmul.msk.f32.vlgmr.msra.gmra.mxu1 %vm44_vm0, %v553_v5  ;;  %v700_v5 = vld [vmem:[%s1210_s6 + $0x90] sm:$0xff] }
0x100d   :  { %751 = vmatpush.msrb.mxu1 %v700_v5 }
0x1089   :  { %v573_v7 = vpop.f32.mrf.mxu1 }
0x108a   :  { %v577_v19 = vrot.slane %v573_v7, 2  ;;  %v683_v7 = vld [vmem:[%s1210_s6 + $0x8] sm:$0xff] }
0x108b   :  { %732 = vmatpush.msrb.mxu0 %v683_v7 }
0x108c   :  { %v579_v20 = vadd.f32 %v577_v19, %v1048_v62  ;;  %v699_v19 = vld [vmem:[%s1210_s6 + $0x88] sm:$0xff] }
0x108d   :  { %752 = vmatpush.msrb.mxu1 %v699_v19 }
0x108e   :  { %857 = vtanh.f32 %v579_v20  ;;  %v792_v22 = vmul.f32 -1.442695, %v579_v20  ;;  %v682_v20 = vld [vmem:[%s1210_s6] sm:$0xff] }
0x108f   :  { %733 = vmatpush.msrb.mxu0 %v682_v20 }
0x1090   :  { %859 = vpow2.f32 %v792_v22  ;;  %v628_v22 = vld [vmem:[%s1209_s5] sm:$0x3]  ;;  %s767_s5 = sshll.u32 %s1212_s8, 4  ;;  %s768_s5 = int_to_ptr.hbm [resolvable:$true] %s767_s5 }
0x1094   :  { %v858_v21 = vpop.eup %857 }
0x1095   :  { %605 = vrot.lane.b32.xlu1 %v858_v21, %s892_s23  ;;  %v698_v21 = vld [vmem:[%s1210_s6 + $0x80] sm:$0xff]  ;;  %s894_s6 = smov [#allocation2]  }
0x1096   :  { %v860_v23 = vpop.eup %859  ;;  %753 = vmatpush.msrb.mxu1 %v698_v21  ;;  %s765_s28 = sshll.u32 %s894_s6, 4  ;;  %s766_s28 = int_to_ptr.vmem [resolvable:$true] %s765_s28 }
0x1097   :  { %v583_v24 = vadd.f32 1.0, %v860_v23  ;;  %v630_v23 = vperm.slane %v628_v22, 0 }
0x1099   :  { %861 = vrcp.f32 %v583_v24  ;;  %v595_v30 = vand.u32 2147483648, %v583_v24  ;;  %vm589_vm15 = vweird.f32 %v583_v24  ;;  %v593_v31 = vand.u32 2147483647, %v583_v24 }
0x109b   :  { %v596_v32 = vor.u32 1.1754944e-38, %v595_v30  ;;  %vm594_vm2 = vcmp.eq.f32.partialorder %v593_v31, 8.507059e+37  ;;  %v800_v31 = vld [vmem:[%s1211_s7] ss:$0 sm:$0xff] }
0x109f   :  { %v862_v25 = vpop.eup %861 }
0x10a0   :  { %v585_v26 = vmul.f32 %v862_v25, %v583_v24  ;;  %vm590_vm14 = vweird.f32 %v862_v25  ;;  %v631_v24 = vperm.slane %v628_v22, 1 }
0x10a1   :  { %vm591_vm1 = vmor %vm589_vm15, %vm590_vm14 }
0x10a2   :  { %v586_v27 = vsub.f32 1.0, %v585_v26 }
0x10a4   :  { %v587_v28 = vmul.f32 %v862_v25, %v586_v27 }
0x10a6   :  { %v588_v29 = vadd.f32 %v862_v25, %v587_v28 }
0x10a8   :  { %v592_v62 = vsel %vm591_vm1, %v862_v25, %v588_v29 }
0x10a9   :  { %v597_v34 = vsel %vm594_vm2, %v596_v32, %v592_v62 }
0x10aa   :  { %v603_v37 = vmul.f32 %v601_v36, %v597_v34 }
0x1107   :  { %v606_v33 = vpop.permute.xlu1 %605 }
0x1108   :  { %v608_v35 = vmul.f32 %v606_v33, %v597_v34 }
0x110a   :  { %610 = vrot.lane.b32.xlu2 %v608_v35, %s893_s3 }
0x1164   :  { %v611_v38 = vpop.permute.xlu2 %610 }
0x1165   :  { %v613_v40 = vadd.f32 %v611_v38, %v603_v37 }
0x1167   :  { %863 = vtanh.f32 %v613_v40 }
0x116d   :  { %v864_v41 = vpop.eup %863 }
0x116e   :  { %616 = vrot.lane.b32.xlu0 %v864_v41, %s892_s23 }
0x11e0   :  { %v617_v49 = vpop.permute.xlu0 %616 }
0x11e1   :  { %v619_v50 = vmul.f32 %v617_v49, %v597_v34 }
0x11e3   :  { %v635_v51 = vrot.slane %v619_v50, 6 }
0x11e5   :  { %636 = vrot.lane.b32.xlu1 %v635_v51, %s893_s3 }
0x1257   :  { %v637_v3 = vpop.permute.xlu1 %636 }
0x1258   :  { %793 = vmatmul.msk.f32.vlgmr.msrb.gmra.mxu2 %vm44_vm0, %v637_v3  ;;  %794 = vmatmul.msk.f32.vlgmr.msra.gmra.mxu3 %vm44_vm0, %v637_v3  ;;  %vm758_vm0 = vcmask 74752  }
0x12db   :  { %v657_v25 = vpop.f32.mrf.mxu2  ;;  %v677_v26 = vpop.f32.mrf.mxu3 }
0x12dc   :  { %v658_v27 = vadd.f32 %v657_v25, %v630_v23  ;;  %v678_v28 = vadd.f32 %v677_v26, %v631_v24 }
0x12de   :  { %v680_v29 = vmax.f32 %v658_v27, 0.0  ;;  %v681_v30 = vmax.f32 %v678_v28, 0.0 }
0x12e0   :  { %734 = vmatmul.f32.vlgmr.msrb.gmra.mxu0 %v680_v29  ;;  %754 = vmatmul.f32.vlgmr.msrb.gmra.mxu1 %v681_v30 }
0x135d   :  { %v735_v62 = vpop.f32.mrf.mxu0  ;;  %v755_v33 = vpop.f32.mrf.mxu1 }
0x135e   :  { %v736_v32 = vadd.f32 %v800_v31, %v735_v62 }
0x1360   :  { %v756_v34 = vadd.f32 %v755_v33, %v736_v32 }
0x1362   :  { %759 = vst.msk [vmem:[#allocation2] sm:$0x3] %vm758_vm0, %v756_v34 }
0x1363   :  { %770 = dma.vmem_to_hbm [thread:$0]  %s766_s28, 32, %s768_s5, [#allocation3]  }
0x1364   :  { %889 = dma.done.wait [#allocation3], 32  }
0x1365   :  { %890 = vsyncadd [#allocation3], 4294967264 }
0x1366   :  { %775 = vsyncpa [#allocation3], 1 }

</bundles_post_ra>
